<compile_context>
chip_gen: v7x
topology: tpu7x:2x2x1
jax: 0.10.0
libtpu: 0.0.40
codegen_flags: <defaults>
</compile_context>

<pallas_src>
import functools

import jax
import jax.numpy as jnp
from jax.experimental import pallas as pl
from jax.experimental.pallas import tpu as pltpu


def _softmax_rows_kernel(x_ref, o_ref, *, temp):
    """Per-row softmax over the full last (lane) axis of the tile."""
    x = x_ref[...].astype(jnp.float32)
    if temp != 1.0:  # trace-time check: skip the VPU multiply when identity
        x = x * temp
    m = jnp.max(x, axis=-1, keepdims=True)
    e = jnp.exp(x - m)
    s = jnp.sum(e, axis=-1, keepdims=True)
    inv = pl.reciprocal(s, approx=True)      # EUP slot
    inv = inv * (2.0 - s * inv)              # one Newton step -> f32 accuracy
    o_ref[...] = (e * inv).astype(o_ref.dtype)


def _softmax_grouped_kernel(x_ref, o_ref, *, temp, d):
    """Lane-dense softmax.

    Each row of the (R, L) tile holds L // d independent softmax groups of `d`
    consecutive lanes (d is a power of two, L % d == 0).  Group max / sum are
    computed with a recursive-doubling butterfly built from pltpu.roll plus a
    masked select; group ids are rolled alongside the data so the in-group
    selection is correct regardless of the hardware roll direction.
    """
    x = x_ref[...].astype(jnp.float32)
    if temp != 1.0:
        x = x * temp
    _, L = x.shape

    # Group id per lane (constant across rows -> keep it (1, L), broadcast later).
    lane = jax.lax.broadcasted_iota(jnp.int32, (1, L), 1)
    gid = lane & (~(d - 1))  # group start index (d is a power of two)

    # Pre-compute per-step (shift, wrap-shift, in-group mask) for the butterfly.
    steps = []
    k = 1
    while k < d:
        sa = k % L
        sb = (k - d) % L
        ga = pltpu.roll(gid, shift=sa, axis=1)
        steps.append((sa, sb, ga == gid))
        k *= 2

    def grouped_allreduce(v, combine):
        # All-reduce within each aligned group of `d` lanes; result broadcast
        # to every lane of the group.
        for sa, sb, in_group in steps:
            cand = jnp.where(in_group,
                             pltpu.roll(v, shift=sa, axis=1),
                             pltpu.roll(v, shift=sb, axis=1))
            v = combine(v, cand)
        return v

    m = grouped_allreduce(x, jnp.maximum)    # per-group max
    e = jnp.exp(x - m)
    s = grouped_allreduce(e, jnp.add)        # per-group sum (exact f32 adds)
    inv = pl.reciprocal(s, approx=True)
    inv = inv * (2.0 - s * inv)              # one Newton step
    o_ref[...] = (e * inv).astype(o_ref.dtype)


def _round_up(a, m):
    return ((a + m - 1) // m) * m


def tempered_softmax(x, temp: float = 1.0):
    """softmax(x * temp) along the last axis (== F.softmax(x * temp, dim=-1))."""
    orig_shape = x.shape
    if x.size == 0:
        return x

    D = orig_shape[-1]
    x2 = x.reshape(-1, D)
    N = x2.shape[0]

    itemsize = jnp.dtype(x.dtype).itemsize
    # sub-32-bit dtypes pack along sublanes: 8 rows (f32), 16 (bf16), 32 (int8)
    sublane_mult = max(8, 32 // itemsize)

    # ---- lane-dense fold for narrow D ---------------------------------------
    g = 128 // D if (D < 128 and 128 % D == 0) else 1
    folded = (g > 1) and (N % g == 0)
    if folded:
        rows, cols = N // g, g * D           # cols == 128: full-lane DMA / vst
        x2 = x2.reshape(rows, cols)          # free: contiguous row-major relabel
        kernel = functools.partial(_softmax_grouped_kernel, temp=float(temp), d=D)
    else:
        rows, cols = N, D
        kernel = functools.partial(_softmax_rows_kernel, temp=float(temp))

    # ---- generation-aware VMEM budget ---------------------------------------
    try:
        vmem_cap = int(pltpu.get_tpu_info().vmem_capacity_bytes)
    except Exception:
        vmem_cap = 64 * 1024 * 1024          # conservative fallback (v7x per-TC)
    vmem_budget = int(vmem_cap * 0.5)        # used for tile sizing
    vmem_limit = int(vmem_cap * 0.75)        # scoped limit handed to Mosaic

    # Per-row VMEM cost: double-buffered in+out tiles in I/O dtype (last dim is
    # padded to 128 lanes in VMEM) plus ~6 live f32 temporaries per element.
    cols_vmem = _round_up(cols, 128)
    per_row_bytes = cols_vmem * (4 * itemsize + 24)
    max_rows_vmem = max(sublane_mult,
                        (vmem_budget // per_row_bytes) // sublane_mult * sublane_mult)

    # Target >= ~8 MiB of in+out HBM traffic per grid step so the ~0.35 us
    # per-step overhead is amortized, independent of cols.
    target_step_bytes = 8 * 1024 * 1024
    target_rows = _round_up(max(1, target_step_bytes // max(1, 2 * cols * itemsize)),
                            sublane_mult)

    if rows <= sublane_mult:
        block_rows = rows                    # single full-extent block
    else:
        block_rows = min(max_rows_vmem, target_rows)
        # Keep >= 2 grid steps when possible so both TensorCores participate on
        # v7x (megacore); costs ~nothing on single-TC v5e/v6e.
        block_rows = min(block_rows, _round_up(pl.cdiv(rows, 2), sublane_mult))
        block_rows = min(block_rows, _round_up(rows, sublane_mult))
        block_rows = max(block_rows, sublane_mult)

    grid = (pl.cdiv(rows, block_rows),)

    out2 = pl.pallas_call(
        kernel,
        out_shape=jax.ShapeDtypeStruct((rows, cols), x.dtype),
        grid_spec=pltpu.PrefetchScalarGridSpec(
            num_scalar_prefetch=0,
            grid=grid,
            in_specs=[pl.BlockSpec((block_rows, cols), lambda i: (i, 0))],
            out_specs=pl.BlockSpec((block_rows, cols), lambda i: (i, 0)),
        ),
        compiler_params=pltpu.CompilerParams(
            dimension_semantics=("parallel",),
            vmem_limit_bytes=vmem_limit,
        ),
    )(x2)

    return out2.reshape(orig_shape)


if __name__ == "__main__":
    key = jax.random.PRNGKey(0)

    # Shape consistent with the module's forward (softmax over dim=-1).
    x = jax.random.normal(key, (2, 4, 16, 16), dtype=jnp.float32)

    # temp = 1.0 (module default): lane-dense folded path (D=16 -> 8 rows/slab).
    out = jax.block_until_ready(tempered_softmax(x, temp=1.0))
    ref = jax.nn.softmax(x, axis=-1)
    assert out.shape == x.shape
    assert jnp.allclose(out, ref, atol=1e-5, rtol=1e-5), "mismatch (temp=1.0)"

    # Non-default temperature.
    out_t = jax.block_until_ready(tempered_softmax(x, temp=0.5))
    ref_t = jax.nn.softmax(x * 0.5, axis=-1)
    assert jnp.allclose(out_t, ref_t, atol=1e-5, rtol=1e-5), "mismatch (temp=0.5)"

    # Row count not a multiple of the fold factor: fallback row-softmax kernel
    # with a partial last block (no padding / slice-back).
    y = jax.random.normal(jax.random.PRNGKey(1), (3, 5, 16), dtype=jnp.float32)
    out_y = jax.block_until_ready(tempered_softmax(y, temp=2.0))
    ref_y = jax.nn.softmax(y * 2.0, axis=-1)
    assert out_y.shape == y.shape
    assert jnp.allclose(out_y, ref_y, atol=1e-5, rtol=1e-5), "mismatch (fallback)"

    # Different group width (D=32) with few folded rows (full-extent block).
    z = jax.random.normal(jax.random.PRNGKey(2), (2, 8, 32), dtype=jnp.float32)
    out_z = jax.block_until_ready(tempered_softmax(z, temp=1.3))
    ref_z = jax.nn.softmax(z * 1.3, axis=-1)
    assert jnp.allclose(out_z, ref_z, atol=1e-5, rtol=1e-5), "mismatch (D=32)"

    # bf16 I/O (compute stays f32 inside the kernel).
    xb = x.astype(jnp.bfloat16)
    out_b = jax.block_until_ready(tempered_softmax(xb, temp=1.0))
    ref_b = jax.nn.softmax(xb.astype(jnp.float32), axis=-1).astype(jnp.bfloat16)
    assert jnp.allclose(out_b.astype(jnp.float32), ref_b.astype(jnp.float32),
                        atol=2e-2, rtol=2e-2), "mismatch (bf16)"

    print("KERNEL_OK")
</pallas_src>

<mosaic_0001>
module attributes {stable_mosaic.version = 11 : i64} {
  func.func @_softmax_grouped_kernel(%arg0: i32, %arg1: memref<8x128xf32, #tpu.memory_space<vmem>>, %arg2: memref<8x128xf32, #tpu.memory_space<vmem>>) attributes {dimension_semantics = [#tpu.dimension_semantics<parallel>], iteration_bounds = array<i64: 2>, scalar_prefetch = 0 : i64, scratch_operands = 0 : i64, tpu.core_type = #tpu.core_type<tc>, window_params = [{transform_indices = @transform_0, window_bounds = array<i64: 8, 128>}, {transform_indices = @transform_1, window_bounds = array<i64: 8, 128>}]} {
    %c0 = arith.constant 0 : index
    %c0_0 = arith.constant 0 : index
    %0 = vector.load %arg1[%c0, %c0_0] : memref<8x128xf32, #tpu.memory_space<vmem>>, vector<8x128xf32>
    %1 = tpu.iota {dimensions = array<i32: 1>} : vector<1x128xi32>
    %c-16_i32 = arith.constant -16 : i32
    %2 = vector.broadcast %c-16_i32 : i32 to vector<1x128xi32>
    %3 = arith.andi %1, %2 : vector<1x128xi32>
    %c1_i32 = arith.constant 1 : i32
    %4 = tpu.dynamic_rotate %3 by %c1_i32 dim 1 : vector<1x128xi32>, i32 -> vector<1x128xi32>
    %5 = arith.cmpi eq, %4, %3 : vector<1x128xi32>
    %c2_i32 = arith.constant 2 : i32
    %6 = tpu.dynamic_rotate %3 by %c2_i32 dim 1 : vector<1x128xi32>, i32 -> vector<1x128xi32>
    %7 = arith.cmpi eq, %6, %3 : vector<1x128xi32>
    %c4_i32 = arith.constant 4 : i32
    %8 = tpu.dynamic_rotate %3 by %c4_i32 dim 1 : vector<1x128xi32>, i32 -> vector<1x128xi32>
    %9 = arith.cmpi eq, %8, %3 : vector<1x128xi32>
    %c8_i32 = arith.constant 8 : i32
    %10 = tpu.dynamic_rotate %3 by %c8_i32 dim 1 : vector<1x128xi32>, i32 -> vector<1x128xi32>
    %11 = arith.cmpi eq, %10, %3 : vector<1x128xi32>
    %c1_i32_1 = arith.constant 1 : i32
    %12 = tpu.dynamic_rotate %0 by %c1_i32_1 dim 1 : vector<8x128xf32>, i32 -> vector<8x128xf32>
    %c113_i32 = arith.constant 113 : i32
    %13 = tpu.dynamic_rotate %0 by %c113_i32 dim 1 : vector<8x128xf32>, i32 -> vector<8x128xf32>
    %14 = vector.shape_cast %5 : vector<1x128xi1> to vector<1x128xi1>
    %15 = vector.broadcast %14 : vector<1x128xi1> to vector<8x128xi1>
    %16 = arith.select %15, %12, %13 : vector<8x128xi1>, vector<8x128xf32>
    %17 = arith.maximumf %0, %16 : vector<8x128xf32>
    %c2_i32_2 = arith.constant 2 : i32
    %18 = tpu.dynamic_rotate %17 by %c2_i32_2 dim 1 : vector<8x128xf32>, i32 -> vector<8x128xf32>
    %c114_i32 = arith.constant 114 : i32
    %19 = tpu.dynamic_rotate %17 by %c114_i32 dim 1 : vector<8x128xf32>, i32 -> vector<8x128xf32>
    %20 = vector.shape_cast %7 : vector<1x128xi1> to vector<1x128xi1>
    %21 = vector.broadcast %20 : vector<1x128xi1> to vector<8x128xi1>
    %22 = arith.select %21, %18, %19 : vector<8x128xi1>, vector<8x128xf32>
    %23 = arith.maximumf %17, %22 : vector<8x128xf32>
    %c4_i32_3 = arith.constant 4 : i32
    %24 = tpu.dynamic_rotate %23 by %c4_i32_3 dim 1 : vector<8x128xf32>, i32 -> vector<8x128xf32>
    %c116_i32 = arith.constant 116 : i32
    %25 = tpu.dynamic_rotate %23 by %c116_i32 dim 1 : vector<8x128xf32>, i32 -> vector<8x128xf32>
    %26 = vector.shape_cast %9 : vector<1x128xi1> to vector<1x128xi1>
    %27 = vector.broadcast %26 : vector<1x128xi1> to vector<8x128xi1>
    %28 = arith.select %27, %24, %25 : vector<8x128xi1>, vector<8x128xf32>
    %29 = arith.maximumf %23, %28 : vector<8x128xf32>
    %c8_i32_4 = arith.constant 8 : i32
    %30 = tpu.dynamic_rotate %29 by %c8_i32_4 dim 1 : vector<8x128xf32>, i32 -> vector<8x128xf32>
    %c120_i32 = arith.constant 120 : i32
    %31 = tpu.dynamic_rotate %29 by %c120_i32 dim 1 : vector<8x128xf32>, i32 -> vector<8x128xf32>
    %32 = vector.shape_cast %11 : vector<1x128xi1> to vector<1x128xi1>
    %33 = vector.broadcast %32 : vector<1x128xi1> to vector<8x128xi1>
    %34 = arith.select %33, %30, %31 : vector<8x128xi1>, vector<8x128xf32>
    %35 = arith.maximumf %29, %34 : vector<8x128xf32>
    %36 = arith.subf %0, %35 : vector<8x128xf32>
    %37 = math.exp %36 : vector<8x128xf32>
    %c1_i32_5 = arith.constant 1 : i32
    %38 = tpu.dynamic_rotate %37 by %c1_i32_5 dim 1 : vector<8x128xf32>, i32 -> vector<8x128xf32>
    %c113_i32_6 = arith.constant 113 : i32
    %39 = tpu.dynamic_rotate %37 by %c113_i32_6 dim 1 : vector<8x128xf32>, i32 -> vector<8x128xf32>
    %40 = vector.shape_cast %5 : vector<1x128xi1> to vector<1x128xi1>
    %41 = vector.broadcast %40 : vector<1x128xi1> to vector<8x128xi1>
    %42 = arith.select %41, %38, %39 : vector<8x128xi1>, vector<8x128xf32>
    %43 = arith.addf %37, %42 : vector<8x128xf32>
    %c2_i32_7 = arith.constant 2 : i32
    %44 = tpu.dynamic_rotate %43 by %c2_i32_7 dim 1 : vector<8x128xf32>, i32 -> vector<8x128xf32>
    %c114_i32_8 = arith.constant 114 : i32
    %45 = tpu.dynamic_rotate %43 by %c114_i32_8 dim 1 : vector<8x128xf32>, i32 -> vector<8x128xf32>
    %46 = vector.shape_cast %7 : vector<1x128xi1> to vector<1x128xi1>
    %47 = vector.broadcast %46 : vector<1x128xi1> to vector<8x128xi1>
    %48 = arith.select %47, %44, %45 : vector<8x128xi1>, vector<8x128xf32>
    %49 = arith.addf %43, %48 : vector<8x128xf32>
    %c4_i32_9 = arith.constant 4 : i32
    %50 = tpu.dynamic_rotate %49 by %c4_i32_9 dim 1 : vector<8x128xf32>, i32 -> vector<8x128xf32>
    %c116_i32_10 = arith.constant 116 : i32
    %51 = tpu.dynamic_rotate %49 by %c116_i32_10 dim 1 : vector<8x128xf32>, i32 -> vector<8x128xf32>
    %52 = vector.shape_cast %9 : vector<1x128xi1> to vector<1x128xi1>
    %53 = vector.broadcast %52 : vector<1x128xi1> to vector<8x128xi1>
    %54 = arith.select %53, %50, %51 : vector<8x128xi1>, vector<8x128xf32>
    %55 = arith.addf %49, %54 : vector<8x128xf32>
    %c8_i32_11 = arith.constant 8 : i32
    %56 = tpu.dynamic_rotate %55 by %c8_i32_11 dim 1 : vector<8x128xf32>, i32 -> vector<8x128xf32>
    %c120_i32_12 = arith.constant 120 : i32
    %57 = tpu.dynamic_rotate %55 by %c120_i32_12 dim 1 : vector<8x128xf32>, i32 -> vector<8x128xf32>
    %58 = vector.shape_cast %11 : vector<1x128xi1> to vector<1x128xi1>
    %59 = vector.broadcast %58 : vector<1x128xi1> to vector<8x128xi1>
    %60 = arith.select %59, %56, %57 : vector<8x128xi1>, vector<8x128xf32>
    %61 = arith.addf %55, %60 : vector<8x128xf32>
    %62 = tpu.reciprocal %61 {approx = true} : vector<8x128xf32> -> vector<8x128xf32>
    %63 = arith.mulf %61, %62 : vector<8x128xf32>
    %cst = arith.constant 2.000000e+00 : f32
    %64 = vector.broadcast %cst : f32 to vector<8x128xf32>
    %65 = arith.subf %64, %63 : vector<8x128xf32>
    %66 = arith.mulf %62, %65 : vector<8x128xf32>
    %67 = arith.mulf %37, %66 : vector<8x128xf32>
    %c0_13 = arith.constant 0 : index
    %c0_14 = arith.constant 0 : index
    %68 = vector.load %arg2[%c0_13, %c0_14] : memref<8x128xf32, #tpu.memory_space<vmem>>, vector<8x128xf32>
    tpu.vector_store %arg2[%c0_13, %c0_14], %67 {strides = array<i32>} : memref<8x128xf32, #tpu.memory_space<vmem>>, vector<8x128xf32>,
    return
  }
  func.func @transform_0(%arg0: i32) -> (i32, i32) {
    %c0_i32 = arith.constant 0 : i32
    %c0_i32_0 = arith.constant 0 : i32
    return %arg0, %c0_i32 : i32, i32
  }
  func.func @transform_1(%arg0: i32) -> (i32, i32) {
    %c0_i32 = arith.constant 0 : i32
    %c0_i32_0 = arith.constant 0 : i32
    return %arg0, %c0_i32 : i32, i32
  }
}

</mosaic_0001>

<bundles_post_ra>
// kernel: tpu_custom_call.1
= control target key start
LH: loop header
LB: loop body
LE: loop exit
PB: predicated region body
PF: predicated region fallthrough
CT: control target
= control target key end

     0   :  { %6 = vsyncpa [#allocation3], 0  ;;  %s720_s0 = inlined_call_operand.hbm [shape: f32[16,128], index: 0, kind: input, shape index: {}]   ;;  %s721_s1 = inlined_call_operand.hbm [shape: f32[16,128], index: 1, kind: output, shape index: {}]  }
   0x1   :  { %8 = vsyncpa [#allocation3 + $0x1], 0 }
   0x2   :  { %9 = vsyncpa [#allocation4], 0 }
   0x3   :  { %11 = vsyncpa [#allocation4 + $0x1], 0  ;;  %s503_s6 = smov 0   ;;  %s505_s7 = smov 0  }
   0x4   :  { %s507_s8 = smov 0   ;;  %s509_s9 = smov 0  }
   0x5 LB: > { %s524_s10 = sadd.s32 4294967295, %s480_s9   ;;  %s313_s11 = sadd.s32 4294967294, %s480_s9   ;;  %s480_s9 = sphi %s509_s9, %s744_s9   ;;  %s476_s8 = sphi %s507_s8, %s743_s8   ;;  %s472_s7 = sphi %s505_s7, %s742_s7   ;;  %s468_s6 = sphi %s503_s6, %s741_s6  }
   0x6   : > { %s528_s12 = sadd.s32 1, %s480_s9   ;;  %s24_s13 = sadd.s32 1, %s476_s8 }
   0x7   : > { %s21_s14 = ssub.s32 %s480_s9, %s528_s12  ;;  %p31_p0 = scmp.ne.s32.totalorder %s476_s8, %s472_s7 }
   0x8   : > { %p22_p1 = scmp.eq.s32.totalorder %s21_s14, 0  ;;  %p32_p2 = scmp.eq.s32.totalorder %s480_s9, 0 }
   0x9   : > { %p37_p3 = scmp.ne.s32.totalorder %s472_s7, %s468_s6  ;;  %p38_p4 = scmp.eq.s32.totalorder %s524_s10, 0 }
   0xa   : > { %s540_s15 = scalar_select %p22_p1, %s476_s8, %s24_s13  }
   0xb   : > { %p542_p5 = por %p32_p2, %p31_p0  ;;  %p546_p6 = por %p38_p4, %p37_p3 }
   0xc   : > { %p61_p7 = scmp.eq.s32.totalorder %s524_s10, 1  ;;  %p67_p8 = scmp.eq.s32.totalorder %s313_s11, 1 }
   0xd   : > { %p337_p10 = scmp.lt.s32.totalorder %s480_s9, 2  ;;  %s87_s20 = sand.u32 1, %s476_s8  }
   0xe   : > { %p553_p11 = por %p61_p7, %p31_p0  ;;  %p557_p12 = por %p67_p8, %p37_p3 }
   0xf   : > { %s317_s21 = sshll.u32 %s480_s9, 7  ;;  %s316_s22 = sshll.u32 %s87_s20, 3 }
  0x10   : > { %s725_s18 = scalar_select %p553_p11, 1, 0 }
  0x11   : > { %s726_s19 = scalar_select %p557_p12, 1, 0 }
  0x12   : > { %s566_s25 = scalar_lea.hbm %s720_s0, %s317_s21  ;;  %s91_s26 = scalar_lea.vmem [#allocation2], %s316_s22 }
  0x13   : > { %s98_s27 = sshll.u32 %s91_s26, 4  ;;  %p570_p13 = pnand %p337_p10, %p542_p5  ;;  %s574_s27 = int_to_ptr.vmem [resolvable:$true] %s98_s27 }
  0x14   : > { %s88_s29 = scalar_lea.sflag [#allocation3], %s87_s20  ;;  %s384_s30 = scalar_lea.hbm %s566_s25, 128 }
  0x15   : > { %p385_p2 = scmp.ne.s32.totalorder %s566_s25, %s384_s30  ;;  %p386_p3 = pneg %p570_p13 }
  0x16   : > { %s389_s4 = scalar_lea.hbm %s720_s0, 256  ;;  %p390_p5 = scmp.lt.u32.totalorder %s566_s25, %s720_s0 }
  0x17   : > { %p387_p4 = pnand %p386_p3, %p385_p2  ;;  %p391_p8 = scmp.lt.u32.totalorder %s389_s4, %s384_s30 }
  0x18   : > { %p393_p9 = scmp.lt.u32.totalorder %s384_s30, %s566_s25 }
  0x19   : > { %p388_p7 = pneg %p387_p4  ;;  %p392_p10 = por %p391_p8, %p390_p5 }
  0x1b   : > { %p394_p0 = por %p393_p9, %p392_p10 }
  0x1d   : > { %p395_p1 = pnand %p394_p0, %p388_p7 }
  0x1f   : > { %398 = shalt.err (!%p395_p1)
}
  0x20   : > { %s399_s13 = scalar_lea.vmem %s574_s27, 128  ;;  %s482_s14 = smov [#allocation2]  }
  0x21   : > { %p400_p2 = scmp.ne.s32.totalorder %s574_s27, %s399_s13  ;;  %s404_s16 = sshll.u32 %s482_s14, 4  ;;  %s405_s16 = int_to_ptr.vmem [resolvable:$false] %s404_s16 }
  0x22   : > { %s406_s20 = scalar_lea.vmem %s405_s16, 256  ;;  %p407_p11 = scmp.lt.s32.totalorder %s574_s27, %s405_s16 }
  0x23   : > { %p402_p4 = pnand %p400_p2, %p386_p3  ;;  %p408_p5 = scmp.lt.s32.totalorder %s406_s20, %s399_s13 }
  0x25   : > { %p403_p12 = pneg %p402_p4  ;;  %p409_p8 = por %p408_p5, %p407_p11 }
  0x27   : > { %p410_p9 = pnand %p409_p8, %p403_p12 }
  0x29   : > { %413 = shalt.err (!%p410_p9)
}
  0x2a   : > { %332 = dma.hbm_to_vmem [thread:$0]  (!%p570_p13), %s566_s25, 128, %s574_s27, %s88_s29  }
  0x2b   : > { %p728_p0 = scmp.lt.s32.totalorder %s480_s9, 3  ;;  %p729_p1 = scmp.ge.s32.totalorder %s480_s9, 1 }
  0x2d   : > { %p104_p3 = pnand %p729_p1, %p728_p0 }
  0x2e   : > { %s608_s21 = sand.u32 (!%p104_p3), 1, %s472_s7  }
  0x2f   : > { %107 = sbr.rel (%p104_p3) target bundleno = 1058 (0x422), region = 24  ;;  %s319_s22 = sshll.u32 (!%p104_p3), %s608_s21, 3 }
  0x30   : > { %s110_s23 = scalar_lea.sflag (!%p104_p3), [#allocation3], %s608_s21  ;;  %s113_s24 = scalar_lea.vmem (!%p104_p3), [#allocation2], %s319_s22 }
  0x36   : > { %459 = dma.done.wait (%p546_p6), %s110_s23, 128  }
  0x37   : > { %461 = vsyncadd (%p546_p6), %s110_s23, 4294967168  ;;  %v133_v0 = vlaneseq  ;;  %s483_s25 = smov 1   ;;  %v132_v3 = vld [vmem:[%s113_s24] sm:$0xff]  ;;  %s484_s26 = smov 113   ;;  %v486_v7 = vmov 0  }
  0x38   : > { %150 = vrot.lane.b32.xlu1 %v132_v3, %s484_s26  ;;  %s485_s27 = smov 2   ;;  %s487_s17 = smov 114  }
  0x39   : > { %v134_v1 = vand.u32 127, %v133_v0  ;;  %v154_v4 = vshrl.u32 %v133_v0, 7  ;;  %s488_s28 = smov 4   ;;  %s489_s29 = smov 116  }
  0x3a   : > { %s490_s30 = smov 8   ;;  %s491_s2 = smov 120  }
  0x3b   : > { %v135_v2 = vand.u32 4294967280, %v134_v1  ;;  %v155_v5 = vsub.s32 0, %v154_v4  ;;  %s322_s3 = sshll.u32 %s524_s10, 7  ;;  %s131_s4 = scalar_lea.vmem [#allocation5], %s319_s22 }
  0x3c   : > { %s243_s5 = sshll.u32 %s131_s4, 4  ;;  %s676_s14 = scalar_lea.hbm %s721_s1, %s322_s3  ;;  %s678_s5 = int_to_ptr.vmem [resolvable:$true] %s243_s5 }
  0x3d   : > { %136 = vrot.lane.b32.xlu0 %v135_v2, %s483_s25  ;;  %139 = vrot.lane.b32.xlu1 %v135_v2, %s485_s27  ;;  %s230_s16 = scalar_lea.sflag [#allocation4], %s608_s21  ;;  %s414_s20 = scalar_lea.vmem %s678_s5, 128 }
  0x3e   : > { %p415_p6 = scmp.ne.s32.totalorder %s678_s5, %s414_s20  ;;  %p738_p11 = scmp.ne.s32.totalorder %s725_s18, 0 }
  0x3f   : > { %s492_s10 = smov [#allocation5]  }
  0x40   : > { %p416_p12 = pnand %p415_p6, %p738_p11  ;;  %s418_s22 = sshll.u32 %s492_s10, 4  ;;  %s419_s22 = int_to_ptr.vmem [resolvable:$false] %s418_s22 }
  0x41   : > { %148 = vrot.lane.b32.xlu0 %v132_v3, %s483_s25  ;;  %s420_s23 = scalar_lea.vmem %s419_s22, 256  ;;  %p421_p7 = scmp.lt.s32.totalorder %s678_s5, %s419_s22 }
  0x42   : > { %p417_p13 = pneg %p416_p12  ;;  %p422_p10 = scmp.lt.s32.totalorder %s420_s23, %s414_s20 }
  0x44   : > { %p423_p2 = por %p422_p10, %p421_p7 }
  0x46   : > { %p424_p4 = pnand %p423_p2, %p417_p13 }
  0xaa   : > { %v151_v10 = vpop.permute.xlu1 %150 }
  0xaf   : > { %v137_v6 = vpop.permute.xlu0 %136  ;;  %v140_v15 = vpop.permute.xlu1 %139 }
  0xb0   : > { %vm138_vm0 = vcmp.eq.s32.totalorder %v137_v6, %v135_v2  ;;  %vm141_vm2 = vcmp.eq.s32.totalorder %v140_v15, %v135_v2 }
  0xb1   : > { %v152_v8 = vsel %vm138_vm0, 1, %v486_v7  ;;  %v164_v16 = vsel %vm141_vm2, 1, %v486_v7 }
  0xb2   : > { %v156_v9 = vrot.slane %v152_v8, %v155_v5  ;;  %v168_v17 = vrot.slane %v164_v16, %v155_v5 }
  0xb3   : > { %v149_v11 = vpop.permute.xlu0 %148 }
  0xb4   : > { %vm622_vm1 = vcmp.eq.s32.totalorder %v156_v9, 1  ;;  %vm631_vm3 = vcmp.eq.s32.totalorder %v168_v17, 1 }
  0xb5   : > { %v158_v13 = vsel %vm622_vm1, %v149_v11, %v151_v10 }
  0xb6   : > { %v159_v14 = vmax.f32 %v132_v3, %v158_v13 }
  0xb8   : > { %162 = vrot.lane.b32.xlu1 %v159_v14, %s487_s17  ;;  %160 = vrot.lane.b32.xlu0 %v159_v14, %s485_s27 }
  0xbc   : > { %142 = vrot.lane.b32.xlu0 %v135_v2, %s488_s28 }
 0x12a   : > { %v163_v19 = vpop.permute.xlu1 %162  ;;  %v161_v20 = vpop.permute.xlu0 %160 }
 0x12b   : > { %v170_v21 = vsel %vm631_vm3, %v161_v20, %v163_v19 }
 0x12c   : > { %v171_v22 = vmax.f32 %v159_v14, %v170_v21 }
 0x12e   : > { %174 = vrot.lane.b32.xlu0 %v171_v22, %s489_s29  ;;  %172 = vrot.lane.b32.xlu1 %v171_v22, %s488_s28  ;;  %v143_v23 = vpop.permute.xlu0 %142 }
 0x12f   : > { %vm144_vm4 = vcmp.eq.s32.totalorder %v143_v23, %v135_v2 }
 0x130   : > { %v176_v24 = vsel %vm144_vm4, 1, %v486_v7 }
 0x131   : > { %v180_v25 = vrot.slane %v176_v24, %v155_v5 }
 0x132   : > { %145 = vrot.lane.b32.xlu1 %v135_v2, %s490_s30 }
 0x133   : > { %vm640_vm5 = vcmp.eq.s32.totalorder %v180_v25, 1 }
 0x1a0   : > { %v173_v27 = vpop.permute.xlu1 %172  ;;  %v175_v28 = vpop.permute.xlu0 %174 }
 0x1a1   : > { %v182_v29 = vsel %vm640_vm5, %v173_v27, %v175_v28 }
 0x1a2   : > { %v183_v30 = vmax.f32 %v171_v22, %v182_v29 }
 0x1a4   : > { %186 = vrot.lane.b32.xlu1 %v183_v30, %s491_s2  ;;  %184 = vrot.lane.b32.xlu0 %v183_v30, %s490_s30  ;;  %v146_v31 = vpop.permute.xlu1 %145 }
 0x1a5   : > { %vm147_vm6 = vcmp.eq.s32.totalorder %v146_v31, %v135_v2 }
 0x1a6   : > { %v188_v32 = vsel %vm147_vm6, 1, %v486_v7 }
 0x1a7   : > { %v192_v33 = vrot.slane %v188_v32, %v155_v5 }
 0x1a9   : > { %vm648_vm7 = vcmp.eq.s32.totalorder %v192_v33, 1 }
 0x216   : > { %v187_v35 = vpop.permute.xlu1 %186  ;;  %v185_v36 = vpop.permute.xlu0 %184 }
 0x217   : > { %v194_v37 = vsel %vm648_vm7, %v185_v36, %v187_v35 }
 0x218   : > { %v195_v38 = vmax.f32 %v183_v30, %v194_v37 }
 0x21a   : > { %v196_v39 = vsub.f32 %v132_v3, %v195_v38 }
 0x21c   : > { %v197_v40 = vmul.f32 1.442695, %v196_v39 }
 0x21e   : > { %380 = vpow2.f32 %v197_v40 }
 0x228   : > { %v381_v41 = vpop.eup %380 }
 0x229   : > { %201 = vrot.lane.b32.xlu1 %v381_v41, %s484_s26  ;;  %199 = vrot.lane.b32.xlu0 %v381_v41, %s483_s25 }
 0x29b   : > { %v202_v42 = vpop.permute.xlu1 %201  ;;  %v200_v43 = vpop.permute.xlu0 %199 }
 0x29c   : > { %v203_v44 = vsel %vm622_vm1, %v200_v43, %v202_v42 }
 0x29d   : > { %v204_v45 = vadd.f32 %v381_v41, %v203_v44 }
 0x29f   : > { %207 = vrot.lane.b32.xlu1 %v204_v45, %s487_s17  ;;  %205 = vrot.lane.b32.xlu0 %v204_v45, %s485_s27 }
 0x311   : > { %v208_v46 = vpop.permute.xlu1 %207  ;;  %v206_v47 = vpop.permute.xlu0 %205 }
 0x312   : > { %v209_v48 = vsel %vm631_vm3, %v206_v47, %v208_v46 }
 0x313   : > { %v210_v49 = vadd.f32 %v209_v48, %v204_v45 }
 0x315   : > { %213 = vrot.lane.b32.xlu1 %v210_v49, %s489_s29  ;;  %211 = vrot.lane.b32.xlu0 %v210_v49, %s488_s28 }
 0x387   : > { %v214_v50 = vpop.permute.xlu1 %213  ;;  %v212_v51 = vpop.permute.xlu0 %211 }
 0x388   : > { %v215_v52 = vsel %vm640_vm5, %v212_v51, %v214_v50 }
 0x389   : > { %v216_v53 = vadd.f32 %v215_v52, %v210_v49 }
 0x38b   : > { %219 = vrot.lane.b32.xlu1 %v216_v53, %s491_s2  ;;  %217 = vrot.lane.b32.xlu0 %v216_v53, %s490_s30 }
 0x3fd   : > { %v220_v54 = vpop.permute.xlu1 %219  ;;  %v218_v55 = vpop.permute.xlu0 %217 }
 0x3fe   : > { %v221_v56 = vsel %vm648_vm7, %v218_v55, %v220_v54 }
 0x3ff   : > { %v222_v57 = vadd.f32 %v221_v56, %v216_v53 }
 0x401   : > { %382 = vrcp.f32 %v222_v57 }
 0x40b   : > { %v383_v58 = vpop.eup %382 }
 0x40c   : > { %v224_v59 = vmul.f32 %v383_v58, %v222_v57 }
 0x40e   : > { %v225_v60 = vsub.f32 2.0, %v224_v59 }
 0x410   : > { %v226_v61 = vmul.f32 %v383_v58, %v225_v60 }
 0x412   : > { %v227_v62 = vmul.f32 %v381_v41, %v226_v61 }
 0x414   : > { %228 = vst [vmem:[%s131_s4] sm:$0xff] %v227_v62 }
 0x415   : > { %427 = shalt.err (!%p424_p4)
}
 0x416   : > { %s428_s21 = scalar_lea.hbm %s676_s14, 128  ;;  %s432_s26 = scalar_lea.hbm %s721_s1, 256 }
 0x417   : > { %p429_p5 = scmp.ne.s32.totalorder %s676_s14, %s428_s21  ;;  %p433_p0 = scmp.lt.u32.totalorder %s676_s14, %s721_s1 }
 0x418   : > { %p434_p1 = scmp.lt.u32.totalorder %s432_s26, %s428_s21  ;;  %p436_p6 = scmp.lt.u32.totalorder %s428_s21, %s676_s14 }
 0x419   : > { %p430_p8 = pnand %p429_p5, %p738_p11 }
 0x41a   : > { %p435_p3 = por %p434_p1, %p433_p0 }
 0x41b   : > { %p431_p9 = pneg %p430_p8 }
 0x41c   : > { %p437_p12 = por %p436_p6, %p435_p3 }
 0x41e   : > { %p438_p13 = pnand %p437_p12, %p431_p9 }
 0x420   : > { %441 = shalt.err (!%p438_p13)
}
 0x421   : > { %327 = dma.vmem_to_hbm [thread:$0]  (%p738_p11), %s678_s5, 128, %s676_s14, %s230_s16  }
 0x422 PF: > { %s255_s28 = sand.u32 1, %s468_s6   ;;  %p739_p7 = scmp.ne.s32.totalorder %s726_s19, 0 }
 0x423   : > { %p740_p10 = scmp.ge.s32.totalorder %s480_s9, 2  ;;  %s256_s29 = scalar_lea.sflag [#allocation4], %s255_s28 }
 0x425   : > { %p334_p2 = pnand %p740_p10, %p739_p7 }
 0x427   : > { %463 = dma.done.wait (!%p334_p2), %s256_s29, 128  }
 0x428   : > { %465 = vsyncadd (!%p334_p2), %s256_s29, 4294967168  ;;  %p14_p4 = scmp.ge.s32.totalorder %s528_s12, 4   ;;  %s741_s6 = smov %s472_s7 }
 0x429   : > { %s742_s7 = smov %s476_s8  ;;  %s743_s8 = smov %s540_s15 }
 0x42a   : > { %s744_s9 = smov %s528_s12  ;;  %16 = sbr.rel (!%p14_p4) target bundleno = 5 (0x5), region = 69 }
 0x431   :  { %261 = vsyncpa [#allocation3], 1 }
 0x432   :  { %263 = vsyncpa [#allocation3 + $0x1], 1 }
 0x433   :  { %264 = vsyncpa [#allocation4], 1 }
 0x434   :  { %266 = vsyncpa [#allocation4 + $0x1], 1 }

</bundles_post_ra>
